<compile_context>
chip_gen: v7x
topology: tpu7x:2x2x1
jax: 0.10.0
libtpu: 0.0.40
codegen_flags: <defaults>
</compile_context>

<pallas_src>
import functools

import jax
import jax.numpy as jnp
from jax.experimental import pallas as pl
from jax.experimental.pallas import tpu as pltpu

LANES = 128
SUBLANES = 8
CHUNK = SUBLANES * LANES            # 1024 elements = one f32 vreg
ROW_TILE_MAX = 4096                 # (4096,128) f32 = 2 MiB per input block
VMEM_LIMIT_BYTES = 48 * 1024 * 1024
EPS = 1e-12


@functools.lru_cache(maxsize=1)
def _detect_parallel_cores():
    """2 TensorCores per chip (megacore) on v4/v5p/v7x; 1 on v5e/v6e.

    Detection is best-effort; falling back to 1 is always correct.
    """
    try:
        kind = jax.devices()[0].device_kind.lower()
    except Exception:
        return 1
    for tag in ("v7", "7x", "v5p", "v4"):
        if tag in kind:
            return 2
    return 1


def _rmselog_kernel(rows_ref, t_ref, p_ref, *rest, has_mask):
    if has_mask:
        m_ref, sum_ref, cnt_ref, acc_s, acc_c = rest
    else:
        m_ref = None
        sum_ref, cnt_ref, acc_s, acc_c = rest

    c = pl.program_id(0)
    i = pl.program_id(1)
    steps_per_core = pl.num_programs(1)

    @pl.when(i == 0)
    def _():
        acc_s[...] = jnp.zeros_like(acc_s)
        acc_c[...] = jnp.zeros_like(acc_c)

    t = t_ref[...]
    p = p_ref[...]
    if t.dtype != jnp.float32:
        t = t.astype(jnp.float32)
    if p.dtype != jnp.float32:
        p = p.astype(jnp.float32)
    row_tile = t.shape[0]

    valid0 = t > 0.0
    if has_mask:
        m = m_ref[...]
        valid0 = valid0 & (m if m.dtype == jnp.bool_ else (m != 0))

    def accumulate(valid):
        vf = valid.astype(jnp.float32)
        safe_t = jnp.where(valid, t, 1.0)
        safe_p = jnp.where(valid, p, 1.0)
        # log difference instead of log(quotient): no f32 divide on the VPU.
        log_err = jnp.log(safe_t) - jnp.log(safe_p + EPS)
        sq = log_err * log_err * vf
        # Row-reduce the tile to a single (8,128) vreg BEFORE touching the
        # accumulators (keeps accumulator traffic to ~2 vld + 2 vst per step).
        acc_s[...] += sq.reshape(row_tile // SUBLANES, SUBLANES, LANES).sum(axis=0)
        acc_c[...] += vf.reshape(row_tile // SUBLANES, SUBLANES, LANES).sum(axis=0)

    # Nominal (unclamped) first row of this block.  For the clamped re-reads
    # of an idle second core this is >= rows, so everything gets masked out.
    row0 = (c * steps_per_core + i) * row_tile
    is_full = row0 + row_tile <= rows_ref[0]

    @pl.when(is_full)
    def _():
        # Interior blocks: no bounds mask in the hot path.
        accumulate(valid0)

    @pl.when(jnp.logical_not(is_full))
    def _():
        # Partial tail block or clamped re-read: mask by nominal row index.
        row_ids = jax.lax.broadcasted_iota(jnp.int32, (row_tile, LANES), 0) + row0
        accumulate(valid0 & (row_ids < rows_ref[0]))

    @pl.when(i == steps_per_core - 1)
    def _():
        sum_ref[...] = jnp.sum(acc_s[...]).reshape(1, 1, 1)
        cnt_ref[...] = jnp.sum(acc_c[...]).reshape(1, 1, 1)


def _tail_partials(t_tail, p_tail, m_tail):
    """Plain-jnp partial (sum of squared log-error, valid count) for the
    <1024-element remainder that the kernel does not cover."""
    t = t_tail.astype(jnp.float32)
    p = p_tail.astype(jnp.float32)
    valid = t > 0.0
    if m_tail is not None:
        valid = valid & (m_tail if m_tail.dtype == jnp.bool_ else (m_tail != 0))
    vf = valid.astype(jnp.float32)
    log_err = jnp.log(jnp.where(valid, t, 1.0)) - jnp.log(jnp.where(valid, p, 1.0) + EPS)
    return jnp.sum(log_err * log_err * vf), jnp.sum(vf)


def rmse_log(target, pred, mask=None, row_tile=ROW_TILE_MAX, ncores=None):
    """Pallas implementation of RMSELog.forward(target, pred, mask)."""
    target = jnp.asarray(target)
    pred = jnp.asarray(pred)
    has_mask = mask is not None
    mask = jnp.asarray(mask) if has_mask else None

    t_flat = target.reshape(-1)
    p_flat = pred.reshape(-1)
    m_flat = mask.reshape(-1) if has_mask else None
    n = t_flat.shape[0]

    # Kernel covers the largest prefix that is a whole number of (8,128)
    # chunks (no pad copy); the remainder (< 1024 elems) is folded in below.
    aligned = (n // CHUNK) * CHUNK
    rows = aligned // LANES

    total_sum = jnp.float32(0.0)
    total_cnt = jnp.float32(0.0)

    if rows > 0:
        if ncores is None:
            ncores = _detect_parallel_cores()
        ncores = max(1, int(ncores))

        def prep(x):
            x = x if aligned == n else x[:aligned]
            return x.reshape(rows, LANES)

        inputs = [prep(t_flat), prep(p_flat)]
        if has_mask:
            inputs.append(prep(m_flat))

        row_tile = max(SUBLANES, min(int(row_tile), rows))
        row_tile -= row_tile % SUBLANES            # multiple of 8 sublanes
        n_blocks = pl.cdiv(rows, row_tile)
        steps_per_core = pl.cdiv(n_blocks, ncores)

        def in_map(c, i, rows_ref):
            # Clamp so no block index is fully out of bounds; clamped
            # re-reads are masked out in-kernel by the nominal row index.
            return (jnp.minimum(c * steps_per_core + i, n_blocks - 1), 0)

        def out_map(c, i, rows_ref):
            return (c, 0, 0)

        in_specs = [pl.BlockSpec((row_tile, LANES), in_map) for _ in inputs]
        out_specs = [pl.BlockSpec((1, 1, 1), out_map),
                     pl.BlockSpec((1, 1, 1), out_map)]

        s, cnt = pl.pallas_call(
            functools.partial(_rmselog_kernel, has_mask=has_mask),
            out_shape=(
                jax.ShapeDtypeStruct((ncores, 1, 1), jnp.float32),
                jax.ShapeDtypeStruct((ncores, 1, 1), jnp.float32),
            ),
            grid_spec=pltpu.PrefetchScalarGridSpec(
                num_scalar_prefetch=1,
                grid=(ncores, steps_per_core),
                in_specs=in_specs,
                out_specs=out_specs,
                scratch_shapes=[
                    pltpu.VMEM((SUBLANES, LANES), jnp.float32),
                    pltpu.VMEM((SUBLANES, LANES), jnp.float32),
                ],
            ),
            compiler_params=pltpu.CompilerParams(
                dimension_semantics=("parallel", "arbitrary"),
                vmem_limit_bytes=VMEM_LIMIT_BYTES,
            ),
        )(jnp.array([rows], jnp.int32), *inputs)

        total_sum = total_sum + jnp.sum(s)
        total_cnt = total_cnt + jnp.sum(cnt)

    if aligned != n:
        ts, tc = _tail_partials(
            t_flat[aligned:], p_flat[aligned:],
            m_flat[aligned:] if has_mask else None)
        total_sum = total_sum + ts
        total_cnt = total_cnt + tc

    # count == 0 -> NaN, matching torch.mean over an empty selection.
    return jnp.sqrt(total_sum / total_cnt)


def rmse_log_ref(target, pred, mask=None):
    """Pure-JAX reference (mirrors the PyTorch module) for verification."""
    target = jnp.asarray(target, jnp.float32)
    pred = jnp.asarray(pred, jnp.float32)
    valid = target > 0
    if mask is not None:
        m = jnp.asarray(mask)
        valid = valid & (m if m.dtype == jnp.bool_ else (m != 0))
    log_err = jnp.log(target / (pred + EPS))
    sq = jnp.where(valid, log_err * log_err, 0.0)
    return jnp.sqrt(jnp.sum(sq) / jnp.sum(valid.astype(jnp.float32)))


if __name__ == "__main__":
    key = jax.random.PRNGKey(0)
    k1, k2, k3, k4 = jax.random.split(key, 4)

    # NCHW inputs, like the PyTorch module would receive (e.g. depth maps).
    target = jax.random.uniform(k1, (2, 4, 16, 16), jnp.float32,
                                minval=-0.5, maxval=2.0)
    pred = jax.random.uniform(k2, (2, 4, 16, 16), jnp.float32,
                              minval=0.1, maxval=2.0)

    # Unmasked path.
    loss = rmse_log(target, pred)
    jax.block_until_ready(loss)
    ref = rmse_log_ref(target, pred)
    assert jnp.allclose(loss, ref, rtol=1e-5, atol=1e-6), (loss, ref)

    # Masked path (mask used purely as a validity predicate, like PyTorch).
    mask = (jax.random.uniform(k3, (2, 4, 16, 16)) > 0.3).astype(jnp.float32)
    loss_m = rmse_log(target, pred, mask)
    jax.block_until_ready(loss_m)
    ref_m = rmse_log_ref(target, pred, mask)
    assert jnp.allclose(loss_m, ref_m, rtol=1e-5, atol=1e-6), (loss_m, ref_m)

    # Non-1024-aligned size exercises the jnp remainder fold (no pad copy).
    t2 = jax.random.uniform(k1, (3, 5, 7, 11), jnp.float32,
                            minval=-0.5, maxval=2.0)
    p2 = jax.random.uniform(k2, (3, 5, 7, 11), jnp.float32,
                            minval=0.1, maxval=2.0)
    loss2 = rmse_log(t2, p2)
    jax.block_until_ready(loss2)
    ref2 = rmse_log_ref(t2, p2)
    assert jnp.allclose(loss2, ref2, rtol=1e-5, atol=1e-6), (loss2, ref2)

    # bf16 inputs: passed through in native dtype (halves HBM traffic),
    # cast to f32 on the loaded tile inside the kernel.
    t3 = jax.random.uniform(k4, (2, 4, 32, 32), jnp.float32,
                            minval=-0.5, maxval=2.0).astype(jnp.bfloat16)
    p3 = jax.random.uniform(k2, (2, 4, 32, 32), jnp.float32,
                            minval=0.1, maxval=2.0).astype(jnp.bfloat16)
    loss3 = rmse_log(t3, p3)
    jax.block_until_ready(loss3)
    ref3 = rmse_log_ref(t3, p3)
    assert jnp.allclose(loss3, ref3, rtol=1e-4, atol=1e-5), (loss3, ref3)

    print("KERNEL_OK")
</pallas_src>

<mosaic_0001>
module attributes {stable_mosaic.version = 11 : i64} {
  func.func @_rmselog_kernel(%arg0: i32, %arg1: i32, %arg2: memref<1xi32, #tpu.memory_space<smem>>, %arg3: memref<16x128xf32, #tpu.memory_space<vmem>>, %arg4: memref<16x128xf32, #tpu.memory_space<vmem>>, %arg5: memref<1x1x1xf32, #tpu.memory_space<vmem>>, %arg6: memref<1x1x1xf32, #tpu.memory_space<vmem>>, %arg7: memref<8x128xf32, #tpu.memory_space<vmem>>, %arg8: memref<8x128xf32, #tpu.memory_space<vmem>>) attributes {dimension_semantics = [#tpu.dimension_semantics<parallel>, #tpu.dimension_semantics<arbitrary>], iteration_bounds = array<i64: 1, 1>, scalar_prefetch = 1 : i64, scratch_operands = 2 : i64, tpu.core_type = #tpu.core_type<tc>, window_params = [{transform_indices = @transform_0, window_bounds = array<i64: 16, 128>}, {transform_indices = @transform_1, window_bounds = array<i64: 16, 128>}, {transform_indices = @transform_2, window_bounds = array<i64: 1, 1, 1>}, {transform_indices = @transform_3, window_bounds = array<i64: 1, 1, 1>}]} {
    %c0_i32 = arith.constant 0 : i32
    %0 = arith.cmpi eq, %arg1, %c0_i32 : i32
    %1 = arith.extui %0 : i1 to i32
    %c0_i32_0 = arith.constant 0 : i32
    %2 = arith.cmpi ne, %1, %c0_i32_0 : i32
    scf.if %2 {
      %cst_10 = arith.constant 0.000000e+00 : f32
      %21 = vector.broadcast %cst_10 : f32 to vector<8x128xf32>
      %c0_11 = arith.constant 0 : index
      %c0_12 = arith.constant 0 : index
      %22 = vector.load %arg7[%c0_11, %c0_12] : memref<8x128xf32, #tpu.memory_space<vmem>>, vector<8x128xf32>
      tpu.vector_store %arg7[%c0_11, %c0_12], %21 {strides = array<i32>} : memref<8x128xf32, #tpu.memory_space<vmem>>, vector<8x128xf32>,
      %cst_13 = arith.constant 0.000000e+00 : f32
      %23 = vector.broadcast %cst_13 : f32 to vector<8x128xf32>
      %c0_14 = arith.constant 0 : index
      %c0_15 = arith.constant 0 : index
      %24 = vector.load %arg8[%c0_14, %c0_15] : memref<8x128xf32, #tpu.memory_space<vmem>>, vector<8x128xf32>
      tpu.vector_store %arg8[%c0_14, %c0_15], %23 {strides = array<i32>} : memref<8x128xf32, #tpu.memory_space<vmem>>, vector<8x128xf32>,
    } else {
    }
    %c0 = arith.constant 0 : index
    %c0_1 = arith.constant 0 : index
    %3 = vector.load %arg3[%c0, %c0_1] : memref<16x128xf32, #tpu.memory_space<vmem>>, vector<16x128xf32>
    %c0_2 = arith.constant 0 : index
    %c0_3 = arith.constant 0 : index
    %4 = vector.load %arg4[%c0_2, %c0_3] : memref<16x128xf32, #tpu.memory_space<vmem>>, vector<16x128xf32>
    %cst = arith.constant 0.000000e+00 : f32
    %5 = vector.broadcast %cst : f32 to vector<16x128xf32>
    %6 = arith.cmpf ogt, %3, %5 : vector<16x128xf32>
    %c1_i32 = arith.constant 1 : i32
    %7 = arith.muli %arg0, %c1_i32 : i32
    %8 = arith.addi %7, %arg1 : i32
    %c16_i32 = arith.constant 16 : i32
    %9 = arith.muli %8, %c16_i32 : i32
    %c16_i32_4 = arith.constant 16 : i32
    %10 = arith.addi %9, %c16_i32_4 : i32
    %c0_5 = arith.constant 0 : index
    %11 = memref.load %arg2[%c0_5] : memref<1xi32, #tpu.memory_space<smem>>
    %12 = arith.cmpi sle, %10, %11 : i32
    %13 = arith.extui %12 : i1 to i32
    %c0_i32_6 = arith.constant 0 : i32
    %14 = arith.cmpi ne, %13, %c0_i32_6 : i32
    scf.if %14 {
      %21 = arith.extui %6 : vector<16x128xi1> to vector<16x128xi32>
      %22 = arith.sitofp %21 : vector<16x128xi32> to vector<16x128xf32>
      %cst_10 = arith.constant 1.000000e+00 : f32
      %23 = vector.broadcast %cst_10 : f32 to vector<16x128xf32>
      %24 = arith.select %6, %3, %23 : vector<16x128xi1>, vector<16x128xf32>
      %cst_11 = arith.constant 1.000000e+00 : f32
      %25 = vector.broadcast %cst_11 : f32 to vector<16x128xf32>
      %26 = arith.select %6, %4, %25 : vector<16x128xi1>, vector<16x128xf32>
      %27 = math.log %24 : vector<16x128xf32>
      %cst_12 = arith.constant 9.99999996E-13 : f32
      %28 = vector.broadcast %cst_12 : f32 to vector<16x128xf32>
      %29 = arith.addf %26, %28 : vector<16x128xf32>
      %30 = math.log %29 : vector<16x128xf32>
      %31 = arith.subf %27, %30 : vector<16x128xf32>
      %32 = arith.mulf %31, %31 : vector<16x128xf32>
      %33 = arith.mulf %32, %22 : vector<16x128xf32>
      %c0_13 = arith.constant 0 : index
      %c0_14 = arith.constant 0 : index
      %34 = vector.load %arg7[%c0_13, %c0_14] : memref<8x128xf32, #tpu.memory_space<vmem>>, vector<8x128xf32>
      %35 = vector.shape_cast %33 : vector<16x128xf32> to vector<2x8x128xf32>
      %cst_15 = arith.constant dense<0.000000e+00> : vector<8x128xf32>
      %36 = vector.multi_reduction <add>, %35, %cst_15 [0] : vector<2x8x128xf32> to vector<8x128xf32>
      %37 = arith.addf %34, %36 : vector<8x128xf32>
      %c0_16 = arith.constant 0 : index
      %c0_17 = arith.constant 0 : index
      %38 = vector.load %arg7[%c0_16, %c0_17] : memref<8x128xf32, #tpu.memory_space<vmem>>, vector<8x128xf32>
      tpu.vector_store %arg7[%c0_16, %c0_17], %37 {strides = array<i32>} : memref<8x128xf32, #tpu.memory_space<vmem>>, vector<8x128xf32>,
      %c0_18 = arith.constant 0 : index
      %c0_19 = arith.constant 0 : index
      %39 = vector.load %arg8[%c0_18, %c0_19] : memref<8x128xf32, #tpu.memory_space<vmem>>, vector<8x128xf32>
      %40 = vector.shape_cast %22 : vector<16x128xf32> to vector<2x8x128xf32>
      %cst_20 = arith.constant dense<0.000000e+00> : vector<8x128xf32>
      %41 = vector.multi_reduction <add>, %40, %cst_20 [0] : vector<2x8x128xf32> to vector<8x128xf32>
      %42 = arith.addf %39, %41 : vector<8x128xf32>
      %c0_21 = arith.constant 0 : index
      %c0_22 = arith.constant 0 : index
      %43 = vector.load %arg8[%c0_21, %c0_22] : memref<8x128xf32, #tpu.memory_space<vmem>>, vector<8x128xf32>
      tpu.vector_store %arg8[%c0_21, %c0_22], %42 {strides = array<i32>} : memref<8x128xf32, #tpu.memory_space<vmem>>, vector<8x128xf32>,
    } else {
    }
    %true = arith.constant true
    %15 = arith.xori %12, %true : i1
    %16 = arith.extui %15 : i1 to i32
    %c0_i32_7 = arith.constant 0 : i32
    %17 = arith.cmpi ne, %16, %c0_i32_7 : i32
    scf.if %17 {
      %21 = tpu.iota {dimensions = array<i32: 0>} : vector<16x128xi32>
      %22 = vector.broadcast %9 : i32 to vector<16x128xi32>
      %23 = arith.addi %21, %22 : vector<16x128xi32>
      %c0_10 = arith.constant 0 : index
      %24 = memref.load %arg2[%c0_10] : memref<1xi32, #tpu.memory_space<smem>>
      %25 = vector.broadcast %24 : i32 to vector<16x128xi32>
      %26 = arith.cmpi slt, %23, %25 : vector<16x128xi32>
      %27 = arith.andi %6, %26 : vector<16x128xi1>
      %28 = arith.extui %27 : vector<16x128xi1> to vector<16x128xi32>
      %29 = arith.sitofp %28 : vector<16x128xi32> to vector<16x128xf32>
      %cst_11 = arith.constant 1.000000e+00 : f32
      %30 = vector.broadcast %cst_11 : f32 to vector<16x128xf32>
      %31 = arith.select %27, %3, %30 : vector<16x128xi1>, vector<16x128xf32>
      %cst_12 = arith.constant 1.000000e+00 : f32
      %32 = vector.broadcast %cst_12 : f32 to vector<16x128xf32>
      %33 = arith.select %27, %4, %32 : vector<16x128xi1>, vector<16x128xf32>
      %34 = math.log %31 : vector<16x128xf32>
      %cst_13 = arith.constant 9.99999996E-13 : f32
      %35 = vector.broadcast %cst_13 : f32 to vector<16x128xf32>
      %36 = arith.addf %33, %35 : vector<16x128xf32>
      %37 = math.log %36 : vector<16x128xf32>
      %38 = arith.subf %34, %37 : vector<16x128xf32>
      %39 = arith.mulf %38, %38 : vector<16x128xf32>
      %40 = arith.mulf %39, %29 : vector<16x128xf32>
      %c0_14 = arith.constant 0 : index
      %c0_15 = arith.constant 0 : index
      %41 = vector.load %arg7[%c0_14, %c0_15] : memref<8x128xf32, #tpu.memory_space<vmem>>, vector<8x128xf32>
      %42 = vector.shape_cast %40 : vector<16x128xf32> to vector<2x8x128xf32>
      %cst_16 = arith.constant dense<0.000000e+00> : vector<8x128xf32>
      %43 = vector.multi_reduction <add>, %42, %cst_16 [0] : vector<2x8x128xf32> to vector<8x128xf32>
      %44 = arith.addf %41, %43 : vector<8x128xf32>
      %c0_17 = arith.constant 0 : index
      %c0_18 = arith.constant 0 : index
      %45 = vector.load %arg7[%c0_17, %c0_18] : memref<8x128xf32, #tpu.memory_space<vmem>>, vector<8x128xf32>
      tpu.vector_store %arg7[%c0_17, %c0_18], %44 {strides = array<i32>} : memref<8x128xf32, #tpu.memory_space<vmem>>, vector<8x128xf32>,
      %c0_19 = arith.constant 0 : index
      %c0_20 = arith.constant 0 : index
      %46 = vector.load %arg8[%c0_19, %c0_20] : memref<8x128xf32, #tpu.memory_space<vmem>>, vector<8x128xf32>
      %47 = vector.shape_cast %29 : vector<16x128xf32> to vector<2x8x128xf32>
      %cst_21 = arith.constant dense<0.000000e+00> : vector<8x128xf32>
      %48 = vector.multi_reduction <add>, %47, %cst_21 [0] : vector<2x8x128xf32> to vector<8x128xf32>
      %49 = arith.addf %46, %48 : vector<8x128xf32>
      %c0_22 = arith.constant 0 : index
      %c0_23 = arith.constant 0 : index
      %50 = vector.load %arg8[%c0_22, %c0_23] : memref<8x128xf32, #tpu.memory_space<vmem>>, vector<8x128xf32>
      tpu.vector_store %arg8[%c0_22, %c0_23], %49 {strides = array<i32>} : memref<8x128xf32, #tpu.memory_space<vmem>>, vector<8x128xf32>,
    } else {
    }
    %c0_i32_8 = arith.constant 0 : i32
    %18 = arith.cmpi eq, %arg1, %c0_i32_8 : i32
    %19 = arith.extui %18 : i1 to i32
    %c0_i32_9 = arith.constant 0 : i32
    %20 = arith.cmpi ne, %19, %c0_i32_9 : i32
    scf.if %20 {
      %c0_10 = arith.constant 0 : index
      %c0_11 = arith.constant 0 : index
      %21 = vector.load %arg7[%c0_10, %c0_11] : memref<8x128xf32, #tpu.memory_space<vmem>>, vector<8x128xf32>
      %22 = vector.shape_cast %21 : vector<8x128xf32> to vector<1x8x128xf32>
      %cst_12 = arith.constant dense<0.000000e+00> : vector<1xf32>
      %23 = vector.multi_reduction <add>, %22, %cst_12 [1, 2] : vector<1x8x128xf32> to vector<1xf32>
      %24 = vector.shape_cast %23 : vector<1xf32> to vector<1x1x1xf32>
      %25 = vector.extract %24[0, 0, 0] : f32 from vector<1x1x1xf32>
      %26 = vector.broadcast %25 : f32 to vector<1x1x1xf32>
      %c0_13 = arith.constant 0 : index
      %c0_14 = arith.constant 0 : index
      %c0_15 = arith.constant 0 : index
      %27 = vector.load %arg5[%c0_13, %c0_14, %c0_15] : memref<1x1x1xf32, #tpu.memory_space<vmem>>, vector<1x1x1xf32>
      tpu.vector_store %arg5[%c0_13, %c0_14, %c0_15], %26 {strides = array<i32>} : memref<1x1x1xf32, #tpu.memory_space<vmem>>, vector<1x1x1xf32>,
      %c0_16 = arith.constant 0 : index
      %c0_17 = arith.constant 0 : index
      %28 = vector.load %arg8[%c0_16, %c0_17] : memref<8x128xf32, #tpu.memory_space<vmem>>, vector<8x128xf32>
      %29 = vector.shape_cast %28 : vector<8x128xf32> to vector<1x8x128xf32>
      %cst_18 = arith.constant dense<0.000000e+00> : vector<1xf32>
      %30 = vector.multi_reduction <add>, %29, %cst_18 [1, 2] : vector<1x8x128xf32> to vector<1xf32>
      %31 = vector.shape_cast %30 : vector<1xf32> to vector<1x1x1xf32>
      %32 = vector.extract %31[0, 0, 0] : f32 from vector<1x1x1xf32>
      %33 = vector.broadcast %32 : f32 to vector<1x1x1xf32>
      %c0_19 = arith.constant 0 : index
      %c0_20 = arith.constant 0 : index
      %c0_21 = arith.constant 0 : index
      %34 = vector.load %arg6[%c0_19, %c0_20, %c0_21] : memref<1x1x1xf32, #tpu.memory_space<vmem>>, vector<1x1x1xf32>
      tpu.vector_store %arg6[%c0_19, %c0_20, %c0_21], %33 {strides = array<i32>} : memref<1x1x1xf32, #tpu.memory_space<vmem>>, vector<1x1x1xf32>,
    } else {
    }
    return
  }
  func.func @transform_0(%arg0: i32, %arg1: i32, %arg2: memref<1xi32, #tpu.memory_space<smem>>) -> (i32, i32) {
    %c1_i32 = arith.constant 1 : i32
    %0 = arith.muli %arg0, %c1_i32 : i32
    %1 = arith.addi %0, %arg1 : i32
    %c0_i32 = arith.constant 0 : i32
    %2 = arith.minsi %1, %c0_i32 : i32
    %c0_i32_0 = arith.constant 0 : i32
    %c0_i32_1 = arith.constant 0 : i32
    return %2, %c0_i32_0 : i32, i32
  }
  func.func @transform_1(%arg0: i32, %arg1: i32, %arg2: memref<1xi32, #tpu.memory_space<smem>>) -> (i32, i32) {
    %c1_i32 = arith.constant 1 : i32
    %0 = arith.muli %arg0, %c1_i32 : i32
    %1 = arith.addi %0, %arg1 : i32
    %c0_i32 = arith.constant 0 : i32
    %2 = arith.minsi %1, %c0_i32 : i32
    %c0_i32_0 = arith.constant 0 : i32
    %c0_i32_1 = arith.constant 0 : i32
    return %2, %c0_i32_0 : i32, i32
  }
  func.func @transform_2(%arg0: i32, %arg1: i32, %arg2: memref<1xi32, #tpu.memory_space<smem>>) -> (i32, i32, i32) {
    %c0_i32 = arith.constant 0 : i32
    %c0_i32_0 = arith.constant 0 : i32
    %c0_i32_1 = arith.constant 0 : i32
    return %arg0, %c0_i32, %c0_i32_0 : i32, i32, i32
  }
  func.func @transform_3(%arg0: i32, %arg1: i32, %arg2: memref<1xi32, #tpu.memory_space<smem>>) -> (i32, i32, i32) {
    %c0_i32 = arith.constant 0 : i32
    %c0_i32_0 = arith.constant 0 : i32
    %c0_i32_1 = arith.constant 0 : i32
    return %arg0, %c0_i32, %c0_i32_0 : i32, i32, i32
  }
}

</mosaic_0001>

<bundles_post_ra>
// kernel: tpu_custom_call.1
= control target key start
LH: loop header
LB: loop body
LE: loop exit
PB: predicated region body
PF: predicated region fallthrough
CT: control target
= control target key end

     0   :  { %s476_s0 = inlined_call_operand.<no memory space> [shape: s32[1], index: 0, kind: input, shape index: {}]   ;;  %s477_s1 = inlined_call_operand.hbm [shape: f32[16,128], index: 1, kind: input, shape index: {}]   ;;  %s478_s2 = inlined_call_operand.hbm [shape: f32[16,128], index: 2, kind: input, shape index: {}]   ;;  %s479_s3 = inlined_call_operand.hbm [shape: f32[1,1,1], index: 3, kind: output, shape index: {0}]   ;;  %s480_s4 = inlined_call_operand.hbm [shape: f32[1,1,1], index: 4, kind: output, shape index: {1}]  }
   0x1   :  { %10 = sst [smem:[#allocation5]] %s476_s0 }
   0x2   :  { %11 = vsyncpa [#allocation7], 0 }
   0x3   :  { %12 = vsyncpa [#allocation10], 0 }
   0x4   :  { %13 = vsyncpa [#allocation8], 0 }
   0x5   :  { %14 = vsyncpa [#allocation13], 0  ;;  %s360_s17 = smov [#allocation6]   ;;  %s264_s21 = scalar_lea.hbm %s477_s1, 256 }
   0x6   :  { %s26_s18 = sshll.u32 %s360_s17, 4  ;;  %p265_p0 = scmp.ne.s32.totalorder %s477_s1, %s264_s21  ;;  %s27_s18 = int_to_ptr.vmem [resolvable:$true] %s26_s18 }
   0x7   :  { %p268_p1 = scmp.lt.u32.totalorder %s264_s21, %s477_s1 }
   0x9   :  { %p270_p2 = pnand %p268_p1, %p265_p0 }
   0xb   :  { %273 = shalt.err (!%p270_p2)
}
   0xc   :  { %s274_s0 = scalar_lea.vmem %s27_s18, 256  ;;  %p279_p4 = scmp.lt.s32.totalorder %s27_s18, %s27_s18 }
   0xd   :  { %p275_p3 = scmp.ne.s32.totalorder %s27_s18, %s274_s0  ;;  %p280_p5 = scmp.lt.s32.totalorder %s274_s0, %s274_s0 }
   0xf   :  { %p281_p6 = por %p280_p5, %p279_p4 }
  0x11   :  { %p282_p7 = pnand %p281_p6, %p275_p3 }
  0x13   :  { %285 = shalt.err (!%p282_p7)
}
  0x14   :  { %s361_s26 = smov 128   ;;  %s362_s27 = smov 8  }
  0x15   :  { %32 = dma.hbm_to_vmem [thread:$0]  %s477_s1, 256, %s27_s18, [#allocation7], %s361_s26, %s361_s26, %s362_s27  }
  0x16   :  { %s363_s30 = smov [#allocation9]   ;;  %s286_s8 = scalar_lea.hbm %s478_s2, 256 }
  0x17   :  { %s44_s5 = sshll.u32 %s363_s30, 4  ;;  %p287_p8 = scmp.ne.s32.totalorder %s478_s2, %s286_s8  ;;  %s45_s5 = int_to_ptr.vmem [resolvable:$true] %s44_s5 }
  0x18   :  { %p290_p9 = scmp.lt.u32.totalorder %s286_s8, %s478_s2 }
  0x1a   :  { %p292_p10 = pnand %p290_p9, %p287_p8 }
  0x1c   :  { %295 = shalt.err (!%p292_p10)
}
  0x1d   :  { %s296_s13 = scalar_lea.vmem %s45_s5, 256  ;;  %p301_p12 = scmp.lt.s32.totalorder %s45_s5, %s45_s5 }
  0x1e   :  { %p297_p11 = scmp.ne.s32.totalorder %s45_s5, %s296_s13  ;;  %p302_p13 = scmp.lt.s32.totalorder %s296_s13, %s296_s13 }
  0x20   :  { %p303_p0 = por %p302_p13, %p301_p12 }
  0x22   :  { %p304_p1 = pnand %p303_p0, %p297_p11 }
  0x24   :  { %307 = shalt.err (!%p304_p1)
}
  0x25   :  { %50 = dma.hbm_to_vmem [thread:$0]  %s478_s2, 256, %s45_s5, [#allocation10], %s361_s26, %s361_s26, %s362_s27  }
  0x26   :  { %352 = dma.done.wait [#allocation7], 256  }
  0x27   :  { %353 = vsyncadd [#allocation7], 4294967040 }
  0x28   :  { %354 = dma.done.wait [#allocation10], 256  }
  0x29   :  { %355 = vsyncadd [#allocation10], 4294967040  ;;  %s421_s15 = sld [smem:[#allocation5]]  ;;  %v364_v0 = vmov 0.0   ;;  %v71_v1 = vld [vmem:[#allocation6] sm:$0xff]  ;;  %v423_v2 = vld [vmem:[#allocation6 + $0x8] sm:$0xff] }
  0x2a   :  { %69 = vst [vmem:[#allocation2] sm:$0xff] %v364_v0  ;;  %70 = vst [vmem:[#allocation3] sm:$0xff] %v364_v0  ;;  %v425_v3 = vld [vmem:[#allocation9] sm:$0xff]  ;;  %v427_v4 = vld [vmem:[#allocation9 + $0x8] sm:$0xff]  ;;  %vm75_vm0 = vcmp.gt.f32.partialorder %v71_v1, 0.0  ;;  %vm76_vm1 = vcmp.gt.f32.partialorder %v423_v2, 0.0 }
  0x2f   :  { %p228_p2 = scmp.lt.s32.totalorder %s421_s15, 16 }
  0x30   :  { %v89_v5 = vsel (!%p228_p2), %vm75_vm0, %v71_v1, 1.0  ;;  %v90_v6 = vsel (!%p228_p2), %vm76_vm1, %v423_v2, 1.0  ;;  %v91_v7 = vsel (!%p228_p2), %vm75_vm0, %v425_v3, 1.0  ;;  %v365_v8 = vmov (!%p228_p2), 0.0  }
  0x31   :  { %84 = sbr.rel (%p228_p2) target bundleno = 77 (0x4d), region = 25  ;;  %v229_v9 = vsel (!%p228_p2), %vm75_vm0, 1.0, %v365_v8  ;;  %v230_v10 = vsel (!%p228_p2), %vm76_vm1, 1.0, %v365_v8  ;;  %v92_v11 = vsel (!%p228_p2), %vm76_vm1, %v427_v4, 1.0  ;;  %248 = vlog2.f32 (!%p228_p2), %v89_v5  ;;  %v113_v12 = vld [vmem:[#allocation3] sm:$0xff] (!%p228_p2)  ;;  %v109_v31 = vld [vmem:[#allocation2] sm:$0xff] (!%p228_p2) }
  0x32   :  { %250 = vlog2.f32 (!%p228_p2), %v90_v6  ;;  %v97_v13 = vadd.f32 (!%p228_p2), 1e-12, %v91_v7  ;;  %v98_v14 = vadd.f32 (!%p228_p2), 1e-12, %v92_v11  ;;  %v114_v15 = vadd.f32 (!%p228_p2), %v230_v10, %v229_v9 }
  0x34   :  { %252 = vlog2.f32 (!%p228_p2), %v97_v13  ;;  %v115_v16 = vadd.f32 (!%p228_p2), %v114_v15, %v113_v12 }
  0x35   :  { %254 = vlog2.f32 (!%p228_p2), %v98_v14 }
  0x36   :  { %116 = vst [vmem:[#allocation3] sm:$0xff] (!%p228_p2), %v115_v16 }
  0x3b   :  { %v249_v17 = vpop.eup %248 }
  0x3c   :  { %v251_v18 = vpop.eup %250  ;;  %v94_v19 = vmul.f32 0.6931472, %v249_v17 }
  0x3d   :  { %v96_v21 = vmul.f32 0.6931472, %v251_v18 }
  0x3e   :  { %v253_v20 = vpop.eup %252 }
  0x3f   :  { %v255_v22 = vpop.eup %254  ;;  %v100_v23 = vmul.f32 0.6931472, %v253_v20 }
  0x40   :  { %v102_v24 = vmul.f32 0.6931472, %v255_v22 }
  0x41   :  { %v103_v25 = vsub.f32 %v94_v19, %v100_v23 }
  0x42   :  { %v104_v26 = vsub.f32 %v96_v21, %v102_v24 }
  0x43   :  { %v105_v27 = vmul.f32 %v103_v25, %v103_v25 }
  0x44   :  { %v106_v28 = vmul.f32 %v104_v26, %v104_v26 }
  0x45   :  { %v107_v29 = vmul.f32 %v229_v9, %v105_v27 }
  0x46   :  { %v108_v30 = vmul.f32 %v230_v10, %v106_v28 }
  0x48   :  { %v110_v32 = vadd.f32 %v108_v30, %v107_v29 }
  0x4a   :  { %v111_v33 = vadd.f32 %v110_v32, %v109_v31 }
  0x4c   :  { %112 = vst [vmem:[#allocation2] sm:$0xff] %v111_v33 }
  0x4d PF:  { %p232_p3 = scmp.ge.s32.totalorder %s421_s15, 16 }
  0x4e   :  { %v121_v34 = vlaneseq (!%p232_p3)  ;;  %s127_s2 = sld [smem:[#allocation5]] (!%p232_p3)  ;;  %v366_v38 = vmov (!%p232_p3), 0.0  }
  0x4f   :  { %120 = sbr.rel (%p232_p3) target bundleno = 116 (0x74), region = 29 }
  0x50   :  { %v122_v35 = vshrl.u32 (!%p232_p3), %v121_v34, 7 }
  0x52   :  { %v123_v36 = vadd.s32 (!%p232_p3), 8, %v122_v35  ;;  %v161_v45 = vld [vmem:[#allocation3] sm:$0xff] (!%p232_p3) }
  0x53   :  { %v157_v0 = vld [vmem:[#allocation2] sm:$0xff] (!%p232_p3) }
  0x54   :  { %v128_v37 = vstv (!%p232_p3), %s127_s2 }
  0x55   :  { %vm129_vm2 = vcmp.lt.s32.totalorder (!%p232_p3), %v122_v35, %v128_v37  ;;  %vm130_vm3 = vcmp.lt.s32.totalorder (!%p232_p3), %v123_v36, %v128_v37 }
  0x56   :  { %vm131_vm4 = vmand %vm75_vm0, %vm129_vm2 }
  0x57   :  { %vm132_vm5 = vmand %vm76_vm1, %vm130_vm3  ;;  %v233_v39 = vsel %vm131_vm4, 1.0, %v366_v38  ;;  %v137_v40 = vsel %vm131_vm4, %v71_v1, 1.0  ;;  %v139_v41 = vsel %vm131_vm4, %v425_v3, 1.0 }
  0x58   :  { %v234_v42 = vsel %vm132_vm5, 1.0, %v366_v38  ;;  %v138_v43 = vsel %vm132_vm5, %v423_v2, 1.0  ;;  %v140_v44 = vsel %vm132_vm5, %v427_v4, 1.0  ;;  %256 = vlog2.f32 %v137_v40 }
  0x59   :  { %258 = vlog2.f32 %v138_v43  ;;  %v145_v46 = vadd.f32 1e-12, %v139_v41  ;;  %v146_v47 = vadd.f32 1e-12, %v140_v44  ;;  %v162_v48 = vadd.f32 %v234_v42, %v233_v39 }
  0x5b   :  { %260 = vlog2.f32 %v145_v46  ;;  %v163_v49 = vadd.f32 %v162_v48, %v161_v45 }
  0x5c   :  { %262 = vlog2.f32 %v146_v47 }
  0x5d   :  { %164 = vst [vmem:[#allocation3] sm:$0xff] %v163_v49 }
  0x62   :  { %v257_v50 = vpop.eup %256 }
  0x63   :  { %v259_v51 = vpop.eup %258  ;;  %v142_v52 = vmul.f32 0.6931472, %v257_v50 }
  0x64   :  { %v144_v54 = vmul.f32 0.6931472, %v259_v51 }
  0x65   :  { %v261_v53 = vpop.eup %260 }
  0x66   :  { %v263_v55 = vpop.eup %262  ;;  %v148_v56 = vmul.f32 0.6931472, %v261_v53 }
  0x67   :  { %v150_v57 = vmul.f32 0.6931472, %v263_v55 }
  0x68   :  { %v151_v58 = vsub.f32 %v142_v52, %v148_v56 }
  0x69   :  { %v152_v59 = vsub.f32 %v144_v54, %v150_v57 }
  0x6a   :  { %v153_v60 = vmul.f32 %v151_v58, %v151_v58 }
  0x6b   :  { %v154_v61 = vmul.f32 %v152_v59, %v152_v59 }
  0x6c   :  { %v155_v62 = vmul.f32 %v233_v39, %v153_v60 }
  0x6d   :  { %v156_v63 = vmul.f32 %v234_v42, %v154_v61 }
  0x6f   :  { %v158_v1 = vadd.f32 %v156_v63, %v155_v62 }
  0x71   :  { %v159_v2 = vadd.f32 %v158_v1, %v157_v0 }
  0x73   :  { %160 = vst [vmem:[#allocation2] sm:$0xff] %v159_v2 }
  0x74 PF:  { %v181_v4 = vld [vmem:[#allocation3] sm:$0xff]  ;;  %s367_s16 = smov [#allocation11]   ;;  %vm179_vm6 = vcmask 0   ;;  %s368_s19 = smov [#allocation12]  }
  0x75   :  { %s199_s17 = sshll.u32 %s367_s16, 4  ;;  %s209_s20 = sshll.u32 %s368_s19, 4  ;;  %s200_s17 = int_to_ptr.vmem [resolvable:$true] %s199_s17  ;;  %s210_s20 = int_to_ptr.vmem [resolvable:$true] %s209_s20 }
  0x76   :  { %s308_s21 = scalar_lea.vmem %s200_s17, 16  ;;  %s312_s22 = scalar_lea.vmem %s200_s17, 32 }
  0x77   :  { %p309_p4 = scmp.ne.s32.totalorder %s200_s17, %s308_s21  ;;  %p313_p5 = scmp.lt.s32.totalorder %s200_s17, %s200_s17 }
  0x78   :  { %p314_p6 = scmp.lt.s32.totalorder %s312_s22, %s308_s21 }
  0x7a   :  { %v168_v3 = vld [vmem:[#allocation2] sm:$0xff]  ;;  %p315_p7 = por %p314_p6, %p313_p5 }
  0x7b   :  { %169 = vadd.xlane.f32.xlu0 %v168_v3 }
  0x7c   :  { %p316_p8 = pnand %p315_p7, %p309_p4 }
  0x7f   :  { %182 = vadd.xlane.f32.xlu0 %v181_v4 }
 0x108   :  { %v170_v5 = vpop.xlane.xlu0 %169 }
 0x109   :  { %v171_v6 = vrot.slane %v170_v5, 4 }
 0x10b   :  { %v172_v7 = vadd.f32 %v171_v6, %v170_v5 }
 0x10c   :  { %v183_v8 = vpop.xlane.xlu0 %182 }
 0x10d   :  { %v173_v9 = vrot.slane %v172_v7, 2  ;;  %v184_v10 = vrot.slane %v183_v8, 4 }
 0x10f   :  { %v185_v11 = vadd.f32 %v184_v10, %v183_v8  ;;  %v174_v12 = vadd.f32 %v173_v9, %v172_v7 }
 0x111   :  { %v186_v13 = vrot.slane %v185_v11, 2  ;;  %v175_v14 = vrot.slane %v174_v12, 1 }
 0x113   :  { %v187_v15 = vadd.f32 %v186_v13, %v185_v11  ;;  %v176_v16 = vadd.f32 %v175_v14, %v174_v12 }
 0x115   :  { %235 = vpush %v176_v16  ;;  %v188_v17 = vrot.slane %v187_v15, 1 }
 0x117   :  { %v189_v18 = vadd.f32 %v188_v17, %v187_v15 }
 0x119   :  { %237 = vpush %v189_v18 }
 0x146   :  { %s236_s18 = spop %235 }
 0x147   :  { %v178_v19 = vstv %s236_s18 }
 0x148   :  { %180 = vst.msk [vmem:[#allocation11] sm:$0x1] %vm179_vm6, %v178_v19 }
 0x149   :  { %319 = shalt.err (!%p316_p8)
}
 0x14a   :  { %s320_s25 = scalar_lea.hbm %s479_s3, 16 }
 0x14b   :  { %p321_p9 = scmp.ne.s32.totalorder %s479_s3, %s320_s25  ;;  %p324_p10 = scmp.lt.u32.totalorder %s320_s25, %s479_s3 }
 0x14d   :  { %p326_p11 = pnand %p324_p10, %p321_p9 }
 0x14f   :  { %329 = shalt.err (!%p326_p11)
}
 0x150   :  { %202 = dma.vmem_to_hbm [thread:$0]  %s200_s17, 16, %s479_s3, [#allocation8]  }
 0x151   :  { %s238_s5 = spop %237  ;;  %s330_s6 = scalar_lea.vmem %s210_s20, 16 }
 0x152   :  { %v191_v20 = vstv %s238_s5  ;;  %p331_p12 = scmp.ne.s32.totalorder %s210_s20, %s330_s6  ;;  %s334_s7 = scalar_lea.vmem %s210_s20, 32 }
 0x153   :  { %192 = vst.msk [vmem:[#allocation12] sm:$0x1] %vm179_vm6, %v191_v20  ;;  %p335_p13 = scmp.lt.s32.totalorder %s210_s20, %s210_s20  ;;  %p336_p0 = scmp.lt.s32.totalorder %s334_s7, %s330_s6 }
 0x155   :  { %p337_p1 = por %p336_p0, %p335_p13 }
 0x157   :  { %p338_p2 = pnand %p337_p1, %p331_p12 }
 0x159   :  { %341 = shalt.err (!%p338_p2)
}
 0x15a   :  { %s342_s10 = scalar_lea.hbm %s480_s4, 16 }
 0x15b   :  { %p343_p3 = scmp.ne.s32.totalorder %s480_s4, %s342_s10  ;;  %p346_p4 = scmp.lt.u32.totalorder %s342_s10, %s480_s4 }
 0x15d   :  { %p348_p5 = pnand %p346_p4, %p343_p3 }
 0x15f   :  { %351 = shalt.err (!%p348_p5)
}
 0x160   :  { %212 = dma.vmem_to_hbm [thread:$0]  %s210_s20, 16, %s480_s4, [#allocation13]  }
 0x161   :  { %356 = dma.done.wait [#allocation8], 16  }
 0x162   :  { %357 = vsyncadd [#allocation8], 4294967280 }
 0x163   :  { %358 = dma.done.wait [#allocation13], 16  }
 0x164   :  { %359 = vsyncadd [#allocation13], 4294967280 }
 0x165   :  { %219 = vsyncpa [#allocation7], 1 }
 0x166   :  { %220 = vsyncpa [#allocation10], 1 }
 0x167   :  { %221 = vsyncpa [#allocation8], 1 }
 0x168   :  { %222 = vsyncpa [#allocation13], 1 }

</bundles_post_ra>
